<compile_context>
chip_gen: v6e
topology: v6e:2x2x1
jax: 0.10.0
libtpu: 0.0.40
codegen_flags: <defaults>
</compile_context>

<pallas_src>
import jax
import jax.numpy as jnp
from jax.experimental import pallas as pl
from jax.experimental.pallas import tpu as pltpu


def _make_attention_kernel(b_chunk, n_sub, with_weights):
    """Kernel over one (TB, S, H) batch block.

    The block is processed in n_sub sub-chunks of b_chunk batch rows each so
    that the f32 temporaries ((b_chunk, S, H) broadcast-multiply products)
    stay bounded even when TB is large (the DMA block size is the real lever
    for this HBM-bound kernel; the compute chunking only bounds vreg/VMEM
    pressure).

    TODO(synk): for H < 128 a lane-packing layout (fold 128/H batch rows into
    the lane axis, or an (TB, S*H) slab with segmented lane reduces) would
    recover the unused lane throughput and avoid masked vst.msk stores; left
    out here because it needs either an HBM-level transpose in the wrapper
    (full extra x rewrite) or in-kernel relayouts whose cost must be profiled.
    TODO(synk): for very long sequences (S*H*4B per batch row approaching the
    v7x 64 MiB VMEM budget) add a second 'arbitrary' grid axis over S with an
    online softmax (running max / running denominator) so TB stays decoupled
    from S.
    """

    def body(x_ref, cv_ref, out_ref, w_ref):
        cv = cv_ref[...].astype(jnp.float32)                     # (1, H) f32

        def do_rows(off):
            # Cast to f32 BEFORE the multiply (bf16-safe logits; free on v5e).
            xs = x_ref[pl.ds(off, b_chunk), :, :].astype(jnp.float32)  # (bc,S,H)

            # attn_scores[b, s] = sum_h x[b, s, h] * cv[h]   (VPU + lane reduce)
            scores = jnp.sum(xs * cv[None, :, :], axis=-1)             # (bc, S)

            # softmax over the sequence axis (dim=1 of the original scores)
            m = jnp.max(scores, axis=-1, keepdims=True)                # (bc, 1)
            e = jnp.exp(scores - m)                                    # EUP
            denom = jnp.sum(e, axis=-1, keepdims=True)
            inv = pl.reciprocal(denom, approx=True)                    # EUP vrcp
            inv = inv * (2.0 - denom * inv)                            # Newton -> full f32
            w = e * inv                                                # (bc, S)

            # weighted_output[b, h] = sum_s w[b, s] * x[b, s, h]
            # VPU broadcast-multiply + sublane reduce; no degenerate M=1 MXU op.
            weighted = jnp.sum(w[:, :, None] * xs, axis=1)             # (bc, H)

            out_ref[pl.ds(off, b_chunk), :] = weighted.astype(out_ref.dtype)
            if with_weights:
                w_ref[pl.ds(off, b_chunk), :] = w.astype(w_ref.dtype)

        if n_sub == 1:
            do_rows(0)
        else:
            @pl.loop(0, n_sub)
            def _(i):
                do_rows(pl.multiple_of(i * b_chunk, b_chunk))

    if with_weights:
        def kernel(x_ref, cv_ref, out_ref, w_ref):
            body(x_ref, cv_ref, out_ref, w_ref)
    else:
        def kernel(x_ref, cv_ref, out_ref):
            body(x_ref, cv_ref, out_ref, None)
    return kernel


def _vmem_budget():
    """Generation-aware VMEM sizing: (block budget, scoped-limit ceiling)."""
    try:
        info = pltpu.get_tpu_info()
        cap = int(getattr(info, "vmem_capacity_bytes", 64 * 2**20))
    except Exception:
        cap = 64 * 2**20                       # conservative: v7x per-TC VMEM
    if cap <= 0:
        cap = 64 * 2**20
    # ~40% of physical VMEM for our pipelined blocks (~51 MiB on v5e/v6e's
    # 128 MiB, ~25 MiB on v7x's 64 MiB); the vmem_limit ceiling leaves
    # headroom for compiler-internal scratch.
    budget = max(8 * 2**20, int(cap * 0.40))
    ceiling = max(16 * 2**20, int(cap * 0.75))
    return budget, ceiling


def _choose_blocks(B, S, H, itemsize, budget_bytes):
    """Pick (tb, b_chunk).

    tb      : batch rows per grid step (DMA block). Multiple of 8 (or == B),
              sized against the generation-aware VMEM budget, with an even
              number of grid steps (>= 2) when the batch allows so both v7x
              TensorCores get balanced work.
    b_chunk : batch rows per in-kernel compute chunk; bounds the (b_chunk,S,H)
              f32 temporaries independently of tb.
    """
    # Double-buffered per-batch-row bytes of the pipelined I/O blocks.
    per_b = 2 * S * H * itemsize + 2 * H * itemsize + 2 * S * 4
    temp_allowance = 4 * 2**20                 # in-kernel f32 temporaries
    usable = max(per_b * 8, budget_bytes - temp_allowance)
    tb_max = max(8, (usable // per_b) // 8 * 8)

    if B <= 8:
        tb = B                                 # single block; block dim == array dim
    else:
        n_steps = max(2, pl.cdiv(B, tb_max))
        n_steps += n_steps % 2                 # even step count (2 TCs on v7x)
        tb = -(-B // n_steps)                  # ceil(B / n_steps)
        tb = -(-tb // 8) * 8                   # round up to sublane multiple
        tb = min(tb, tb_max)

    # ~3 live (b_chunk, S, H) f32 arrays in flight per compute chunk.
    temp_per_row = 3 * S * H * 4
    bc_max = max(8, (temp_allowance // max(1, temp_per_row)) // 8 * 8)
    b_chunk = min(tb, bc_max)
    if 0 < b_chunk < tb and tb % b_chunk != 0:
        tb = (tb // b_chunk) * b_chunk         # keep tb a multiple of b_chunk
    return tb, b_chunk


def attention_forward(x, context_vector, *, return_weights=True):
    """x: (B, S, H), context_vector: (H, 1).

    Returns (weighted_output: (B, H), attn_weights: (B, S) f32) matching the
    PyTorch Attention.forward; with return_weights=False only the weighted
    output is computed/stored (saves one HBM write stream per step).
    """
    B, S, H = x.shape
    itemsize = x.dtype.itemsize
    cv = context_vector.reshape(1, H)

    budget, limit_ceiling = _vmem_budget()
    tb, b_chunk = _choose_blocks(B, S, H, itemsize, budget)
    n_sub = max(1, tb // b_chunk)
    grid_b = pl.cdiv(B, tb)

    # Honest VMEM estimate: double-buffered x/out/w blocks + cv + f32 temps.
    needed = (2 * tb * S * H * itemsize          # x block (double-buffered)
              + 2 * tb * H * itemsize            # weighted-output block
              + (2 * tb * S * 4 if return_weights else 0)   # weights block (f32)
              + 2 * H * max(4, itemsize)         # context vector
              + 3 * b_chunk * S * H * 4)         # in-kernel f32 temporaries
    vmem_limit = int(min(limit_ceiling, max(16 * 2**20, needed + 2 * 2**20)))

    kernel = _make_attention_kernel(b_chunk, n_sub, return_weights)

    out_shapes = [jax.ShapeDtypeStruct((B, H), x.dtype)]
    out_specs = [pl.BlockSpec((tb, H), lambda b: (b, 0))]
    if return_weights:
        out_shapes.append(jax.ShapeDtypeStruct((B, S), jnp.float32))
        out_specs.append(pl.BlockSpec((tb, S), lambda b: (b, 0)))

    results = pl.pallas_call(
        kernel,
        out_shape=tuple(out_shapes),
        grid_spec=pltpu.PrefetchScalarGridSpec(
            num_scalar_prefetch=0,
            grid=(grid_b,),
            in_specs=[
                # No deeper buffering than 2: the kernel is HBM-bound, VMEM is
                # better spent on a larger tb.
                pl.BlockSpec((tb, S, H), lambda b: (b, 0, 0)),
                pl.BlockSpec((1, H), lambda b: (0, 0)),
            ],
            out_specs=tuple(out_specs),
        ),
        compiler_params=pltpu.CompilerParams(
            dimension_semantics=("parallel",),
            vmem_limit_bytes=vmem_limit,
        ),
    )(x, cv)

    if return_weights:
        out, w = results
        return out, w
    (out,) = results
    return out


def reference_forward(x, context_vector):
    # Pure-JAX reference of the PyTorch Attention.forward.
    scores = jnp.einsum("bsh,ho->bs", x, context_vector)   # (B, S)
    weights = jax.nn.softmax(scores, axis=1)               # (B, S)
    weighted = jnp.einsum("bs,bsh->bh", weights, x)        # (B, H)
    return weighted, weights


if __name__ == "__main__":
    key = jax.random.PRNGKey(0)
    kx, kcv, kx2 = jax.random.split(key, 3)

    # Shapes implied by the module: x = LSTM outputs
    # (batch, seq_length, hidden_size * num_directions).
    B, S, H = 2, 8, 32
    x = jax.random.normal(kx, (B, S, H), dtype=jnp.float32)
    # nn.init.uniform_(context_vector, -0.1, 0.1), shape (hidden_size, 1)
    context_vector = jax.random.uniform(
        kcv, (H, 1), dtype=jnp.float32, minval=-0.1, maxval=0.1
    )

    weighted_out, attn_weights = attention_forward(x, context_vector)
    jax.block_until_ready((weighted_out, attn_weights))

    ref_out, ref_w = reference_forward(x, context_vector)
    assert weighted_out.shape == (B, H)
    assert attn_weights.shape == (B, S)
    assert jnp.allclose(weighted_out, ref_out, atol=2e-5, rtol=2e-5)
    assert jnp.allclose(attn_weights, ref_w, atol=2e-5, rtol=2e-5)

    # Larger batch exercises the multi-step batch-blocked grid path.
    B2 = 16
    x2 = jax.random.normal(kx2, (B2, S, H), dtype=jnp.float32)
    out2, w2 = attention_forward(x2, context_vector)
    jax.block_until_ready((out2, w2))
    ref_out2, ref_w2 = reference_forward(x2, context_vector)
    assert out2.shape == (B2, H)
    assert w2.shape == (B2, S)
    assert jnp.allclose(out2, ref_out2, atol=2e-5, rtol=2e-5)
    assert jnp.allclose(w2, ref_w2, atol=2e-5, rtol=2e-5)

    # Weights-free variant (skips the (B, S) store).
    out3 = attention_forward(x2, context_vector, return_weights=False)
    jax.block_until_ready(out3)
    assert jnp.allclose(out3, ref_out2, atol=2e-5, rtol=2e-5)

    print("KERNEL_OK")
</pallas_src>

<mosaic_0001>
module attributes {stable_mosaic.version = 11 : i64} {
  func.func @kernel(%arg0: i32, %arg1: memref<2x8x32xf32, #tpu.memory_space<vmem>>, %arg2: memref<1x32xf32, #tpu.memory_space<vmem>>, %arg3: memref<2x32xf32, #tpu.memory_space<vmem>>, %arg4: memref<2x8xf32, #tpu.memory_space<vmem>>) attributes {dimension_semantics = [#tpu.dimension_semantics<parallel>], iteration_bounds = array<i64: 1>, scalar_prefetch = 0 : i64, scratch_operands = 0 : i64, tpu.core_type = #tpu.core_type<tc>, window_params = [{transform_indices = @transform_0, window_bounds = array<i64: 2, 8, 32>}, {pipeline_mode = #tpu.pipeline_mode<synchronous>, transform_indices = @transform_1, window_bounds = array<i64: 1, 32>}, {transform_indices = @transform_2, window_bounds = array<i64: 2, 32>}, {transform_indices = @transform_3, window_bounds = array<i64: 2, 8>}]} {
    %c0 = arith.constant 0 : index
    %c0_0 = arith.constant 0 : index
    %0 = vector.load %arg2[%c0, %c0_0] : memref<1x32xf32, #tpu.memory_space<vmem>>, vector<1x32xf32>
    %c0_1 = arith.constant 0 : index
    %c0_2 = arith.constant 0 : index
    %c0_3 = arith.constant 0 : index
    %1 = vector.load %arg1[%c0_1, %c0_2, %c0_3] : memref<2x8x32xf32, #tpu.memory_space<vmem>>, vector<2x8x32xf32>
    %2 = vector.shape_cast %0 : vector<1x32xf32> to vector<1x1x32xf32>
    %3 = vector.broadcast %2 : vector<1x1x32xf32> to vector<2x8x32xf32>
    %4 = arith.mulf %1, %3 : vector<2x8x32xf32>
    %cst = arith.constant dense<0.000000e+00> : vector<2x8xf32>
    %5 = vector.multi_reduction <add>, %4, %cst [2] : vector<2x8x32xf32> to vector<2x8xf32>
    %cst_4 = arith.constant dense<0xFF800000> : vector<2xf32>
    %6 = vector.multi_reduction <maximumf>, %5, %cst_4 [1] : vector<2x8xf32> to vector<2xf32>
    %7 = vector.shape_cast %6 : vector<2xf32> to vector<2x1xf32>
    %8 = vector.broadcast %7 : vector<2x1xf32> to vector<2x8xf32>
    %9 = arith.subf %5, %8 : vector<2x8xf32>
    %10 = math.exp %9 : vector<2x8xf32>
    %cst_5 = arith.constant dense<0.000000e+00> : vector<2xf32>
    %11 = vector.multi_reduction <add>, %10, %cst_5 [1] : vector<2x8xf32> to vector<2xf32>
    %12 = vector.shape_cast %11 : vector<2xf32> to vector<2x1xf32>
    %13 = tpu.reciprocal %12 {approx = true} : vector<2x1xf32> -> vector<2x1xf32>
    %14 = arith.mulf %12, %13 : vector<2x1xf32>
    %cst_6 = arith.constant 2.000000e+00 : f32
    %15 = vector.broadcast %cst_6 : f32 to vector<2x1xf32>
    %16 = arith.subf %15, %14 : vector<2x1xf32>
    %17 = arith.mulf %13, %16 : vector<2x1xf32>
    %18 = vector.broadcast %17 : vector<2x1xf32> to vector<2x8xf32>
    %19 = arith.mulf %10, %18 : vector<2x8xf32>
    %20 = vector.shape_cast %19 : vector<2x8xf32> to vector<2x8x1xf32>
    %21 = vector.broadcast %20 : vector<2x8x1xf32> to vector<2x8x32xf32>
    %22 = arith.mulf %21, %1 : vector<2x8x32xf32>
    %cst_7 = arith.constant dense<0.000000e+00> : vector<2x32xf32>
    %23 = vector.multi_reduction <add>, %22, %cst_7 [1] : vector<2x8x32xf32> to vector<2x32xf32>
    %c0_8 = arith.constant 0 : index
    %c0_9 = arith.constant 0 : index
    %24 = vector.load %arg3[%c0_8, %c0_9] : memref<2x32xf32, #tpu.memory_space<vmem>>, vector<2x32xf32>
    tpu.vector_store %arg3[%c0_8, %c0_9], %23 {strides = array<i32>} : memref<2x32xf32, #tpu.memory_space<vmem>>, vector<2x32xf32>,
    %c0_10 = arith.constant 0 : index
    %c0_11 = arith.constant 0 : index
    %25 = vector.load %arg4[%c0_10, %c0_11] : memref<2x8xf32, #tpu.memory_space<vmem>>, vector<2x8xf32>
    tpu.vector_store %arg4[%c0_10, %c0_11], %19 {strides = array<i32>} : memref<2x8xf32, #tpu.memory_space<vmem>>, vector<2x8xf32>,
    return
  }
  func.func @transform_0(%arg0: i32) -> (i32, i32, i32) {
    %c0_i32 = arith.constant 0 : i32
    %c0_i32_0 = arith.constant 0 : i32
    %c0_i32_1 = arith.constant 0 : i32
    return %arg0, %c0_i32, %c0_i32_0 : i32, i32, i32
  }
  func.func @transform_1(%arg0: i32) -> (i32, i32) {
    %c0_i32 = arith.constant 0 : i32
    %c0_i32_0 = arith.constant 0 : i32
    %c0_i32_1 = arith.constant 0 : i32
    return %c0_i32, %c0_i32_0 : i32, i32
  }
  func.func @transform_2(%arg0: i32) -> (i32, i32) {
    %c0_i32 = arith.constant 0 : i32
    %c0_i32_0 = arith.constant 0 : i32
    return %arg0, %c0_i32 : i32, i32
  }
  func.func @transform_3(%arg0: i32) -> (i32, i32) {
    %c0_i32 = arith.constant 0 : i32
    %c0_i32_0 = arith.constant 0 : i32
    return %arg0, %c0_i32 : i32, i32
  }
}

</mosaic_0001>

<bundles_post_ra>
// kernel: tpu_custom_call.1
= control target key start
LH: loop header
LB: loop body
LE: loop exit
PB: predicated region body
PF: predicated region fallthrough
CT: control target
= control target key end

     0   :  { %9 = vsyncpa [#allocation3], 0  ;;  %s327_s0 = inlined_call_operand.hbm [shape: f32[2,8,32], index: 0, kind: input, shape index: {}]   ;;  %s328_s1 = inlined_call_operand.vmem [shape: f32[1,32], index: 1, kind: input, shape index: {}]   ;;  %s329_s2 = inlined_call_operand.hbm [shape: f32[2,32], index: 2, kind: output, shape index: {0}]   ;;  %s330_s3 = inlined_call_operand.hbm [shape: f32[2,8], index: 3, kind: output, shape index: {1}]  }
   0x1   :  { %10 = vsyncpa [#allocation4], 0 }
   0x2   :  { %11 = vsyncpa [#allocation7], 0  ;;  %s274_s12 = smov [#allocation2]  }
   0x3   :  { %s17_s13 = sshll.u32 %s274_s12, 4  ;;  %s18_s13 = int_to_ptr.vmem [resolvable:$true] %s17_s13 }
   0x4   :  { %s216_s14 = scalar_lea.vmem %s18_s13, 256  ;;  %p221_p1 = scmp.lt.s32.totalorder %s18_s13, %s18_s13 }
   0x5   :  { %p217_p0 = scmp.ne.s32.totalorder %s18_s13, %s216_s14  ;;  %p222_p2 = scmp.lt.s32.totalorder %s216_s14, %s216_s14 }
   0x7   :  { %p223_p3 = por %p222_p2, %p221_p1 }
   0x9   :  { %p224_p4 = pnand %p223_p3, %p217_p0 }
   0xb   :  { %227 = shalt.err (!%p224_p4)
}
   0xc   :  { %s275_s15 = smov 128   ;;  %s276_s16 = smov 8  }
   0xd   :  { %23 = dma.hbm_to_vmem [thread:$0]  %s327_s0, 256, %s18_s13, [#allocation3], %s275_s15, %s275_s15, %s276_s16  }
   0xe   :  { %268 = dma.done.wait [#allocation3], 256  }
   0xf   :  { %269 = vsyncadd [#allocation3], 4294967040  ;;  %v193_v0 = vld [vmem:[%s328_s1] ss:$0 sm:$0xff]  ;;  %vm40_vm0 = vcmask 261120   ;;  %v306_v2 = vld [vmem:[#allocation2 + $0x8] sm:$0xff]  ;;  %v49_v7 = vlaneseq }
  0x10   :  { %v30_v1 = vld [vmem:[#allocation2] sm:$0xff]  ;;  %v39_v4 = vmul.f32 %v193_v0, %v306_v2  ;;  %vm59_vm1 = vcmask 1041409   ;;  %vm62_vm2 = vcmask 58368   ;;  %v277_v17 = vmov 0   ;;  %s278_s0 = smov [#allocation6]  }
  0x11   :  { %v38_v3 = vmul.f32 %v193_v0, %v30_v1  ;;  %v50_v8 = vand.u32 127, %v49_v7  ;;  %v52_v9 = vshrl.u32 %v49_v7, 7  ;;  %201 = vset.pattern.permute.xlu0 %v277_v17  ;;  %200 = vset.pattern.permute.xlu1 %v277_v17  ;;  %s180_s1 = sshll.u32 %s278_s0, 4  ;;  %s181_s1 = int_to_ptr.vmem [resolvable:$true] %s180_s1 }
  0x12   :  { %v44_v6 = vsel %vm40_vm0, %v39_v4, 0.0  ;;  %s228_s21 = scalar_lea.vmem %s181_s1, 32  ;;  %p233_p6 = scmp.lt.s32.totalorder %s181_s1, %s181_s1 }
  0x13   :  { %v41_v5 = vsel %vm40_vm0, %v38_v3, 0.0  ;;  %v53_v11 = vsub.s32 %v50_v8, %v52_v9  ;;  %v69_v18 = vsub.s32 0, %v52_v9  ;;  %v73_v19 = vsub.s32 1, %v52_v9  ;;  %p229_p5 = scmp.ne.s32.totalorder %s181_s1, %s228_s21  ;;  %p234_p7 = scmp.lt.s32.totalorder %s228_s21, %s228_s21 }
  0x14   :  { %42 = vadd.xlane.f32.xlu0 %v41_v5 }
  0x15   :  { %p235_p8 = por %p234_p7, %p233_p6 }
  0x17   :  { %p236_p9 = pnand %p235_p8, %p229_p5 }
  0x18   :  { %45 = vadd.xlane.f32.xlu0 %v44_v6 }
  0x9d   :  { %v43_v10 = vpop.xlane.xlu0 %42 }
  0x9e   :  { %v54_v13 = vrot.slane %v43_v10, %v53_v11 }
  0xa1   :  { %v46_v12 = vpop.xlane.xlu0 %45 }
  0xa2   :  { %v58_v14 = vrot.slane %v46_v12, %v53_v11 }
  0xa4   :  { %v60_v15 = vsel %vm59_vm1, %v58_v14, %v54_v13 }
  0xa5   :  { %v63_v16 = vsel %vm62_vm2, %v60_v15, -inf }
  0xa6   :  { %64 = vmax.xlane.f32.xlu1 %v63_v16 }
 0x12f   :  { %v65_v20 = vpop.xlane.xlu1 %64 }
 0x130   :  { %v70_v21 = vrot.slane %v65_v20, %v69_v18  ;;  %v74_v22 = vrot.slane %v65_v20, %v73_v19 }
 0x132   :  { %v77_v23 = vsub.f32 %v43_v10, %v70_v21  ;;  %v78_v24 = vsub.f32 %v46_v12, %v74_v22 }
 0x134   :  { %v79_v25 = vmul.f32 1.442695, %v77_v23  ;;  %v81_v26 = vmul.f32 1.442695, %v78_v24 }
 0x136   :  { %202 = vpow2.f32 %v79_v25 }
 0x137   :  { %204 = vpow2.f32 %v81_v26 }
 0x143   :  { %v203_v27 = vpop.eup %202 }
 0x144   :  { %v205_v28 = vpop.eup %204  ;;  %86 = vperm.xlu1 %200, %v203_v27  }
 0x145   :  { %89 = vperm.xlu0 %201, %v205_v28  }
 0x1bf   :  { %v87_v29 = vpop.permute.xlu1 %86 }
 0x1c0   :  { %v90_v30 = vpop.permute.xlu0 %89  ;;  %v94_v31 = vrot.slane %v87_v29, %v53_v11 }
 0x1c1   :  { %v98_v32 = vrot.slane %v90_v30, %v53_v11 }
 0x1c3   :  { %v99_v33 = vsel %vm59_vm1, %v98_v32, %v94_v31 }
 0x1c4   :  { %v101_v34 = vsel %vm62_vm2, %v99_v33, 0.0 }
 0x1c5   :  { %102 = vadd.xlane.f32.xlu1 %v101_v34 }
 0x24e   :  { %v103_v35 = vpop.xlane.xlu1 %102 }
 0x24f   :  { %206 = vrcp.f32 %v103_v35 }
 0x25c   :  { %v207_v36 = vpop.eup %206 }
 0x25d   :  { %v105_v37 = vmul.f32 %v207_v36, %v103_v35 }
 0x25f   :  { %v106_v38 = vsub.f32 2.0, %v105_v37 }
 0x261   :  { %v107_v39 = vmul.f32 %v207_v36, %v106_v38 }
 0x263   :  { %v112_v40 = vrot.slane %v107_v39, %v69_v18  ;;  %v116_v41 = vrot.slane %v107_v39, %v73_v19 }
 0x265   :  { %v119_v42 = vmul.f32 %v203_v27, %v112_v40  ;;  %v120_v43 = vmul.f32 %v205_v28, %v116_v41 }
 0x267   :  { %123 = vperm.xlu0 %201, %v119_v42  }
 0x26b   :  { %128 = vperm.xlu0 %201, %v120_v43  }
 0x2e2   :  { %v124_v44 = vpop.permute.xlu0 %123 }
 0x2e3   :  { %v131_v45 = vmul.f32 %v124_v44, %v30_v1  ;;  %v156_v49 = vrot.slane %v124_v44, %v53_v11 }
 0x2e5   :  { %v133_v46 = vsel %vm40_vm0, %v131_v45, 0.0 }
 0x2e6   :  { %v134_v47 = vrot.slane %v133_v46, 4  ;;  %v129_v48 = vpop.permute.xlu0 %128 }
 0x2e7   :  { %v132_v50 = vmul.f32 %v129_v48, %v306_v2  ;;  %v160_v51 = vrot.slane %v129_v48, %v53_v11 }
 0x2e8   :  { %v135_v52 = vadd.f32 %v134_v47, %v133_v46 }
 0x2e9   :  { %v140_v53 = vsel %vm40_vm0, %v132_v50, 0.0  ;;  %v161_v54 = vsel %vm59_vm1, %v160_v51, %v156_v49 }
 0x2ea   :  { %v136_v55 = vrot.slane %v135_v52, 2  ;;  %v141_v56 = vrot.slane %v140_v53, 4  ;;  %163 = vst.msk [vmem:[#allocation6] sm:$0x3] %vm62_vm2, %v161_v54 }
 0x2eb   :  { %239 = shalt.err (!%p236_p9)
}
 0x2ec   :  { %183 = dma.vmem_to_hbm [thread:$0]  %s181_s1, 32, %s330_s3, [#allocation7]   ;;  %v137_v57 = vadd.f32 %v136_v55, %v135_v52  ;;  %v142_v58 = vadd.f32 %v141_v56, %v140_v53  ;;  %vm151_vm3 = vcmask 254976  }
 0x2ed   :  { %s279_s24 = smov [#allocation5]  }
 0x2ee   :  { %v143_v59 = vrot.slane %v142_v58, 2  ;;  %v138_v60 = vrot.slane %v137_v57, 1  ;;  %s170_s25 = sshll.u32 %s279_s24, 4  ;;  %s171_s25 = int_to_ptr.vmem [resolvable:$true] %s170_s25 }
 0x2ef   :  { %s248_s26 = scalar_lea.vmem %s171_s25, 32  ;;  %p253_p11 = scmp.lt.s32.totalorder %s171_s25, %s171_s25 }
 0x2f0   :  { %v144_v61 = vadd.f32 %v143_v59, %v142_v58  ;;  %v139_v0 = vadd.f32 %v138_v60, %v137_v57  ;;  %p249_p10 = scmp.ne.s32.totalorder %s171_s25, %s248_s26  ;;  %p254_p12 = scmp.lt.s32.totalorder %s248_s26, %s248_s26 }
 0x2f2   :  { %v145_v62 = vrot.slane %v144_v61, 1  ;;  %p255_p13 = por %p254_p12, %p253_p11 }
 0x2f4   :  { %v146_v63 = vadd.f32 %v145_v62, %v144_v61  ;;  %p256_p0 = pnand %p255_p13, %p249_p10 }
 0x2f6   :  { %v149_v1 = vsel %vm59_vm1, %v146_v63, %v139_v0 }
 0x2f7   :  { %152 = vst.msk [vmem:[#allocation5] sm:$0x3] %vm151_vm3, %v149_v1 }
 0x2f8   :  { %259 = shalt.err (!%p256_p0)
}
 0x2f9   :  { %173 = dma.vmem_to_hbm [thread:$0]  %s171_s25, 32, %s329_s2, [#allocation4]  }
 0x2fa   :  { %270 = dma.done.wait [#allocation4], 32  }
 0x2fb   :  { %271 = vsyncadd [#allocation4], 4294967264 }
 0x2fc   :  { %272 = dma.done.wait [#allocation7], 32  }
 0x2fd   :  { %273 = vsyncadd [#allocation7], 4294967264 }
 0x2fe   :  { %190 = vsyncpa [#allocation3], 1 }
 0x2ff   :  { %191 = vsyncpa [#allocation4], 1 }
 0x300   :  { %192 = vsyncpa [#allocation7], 1 }

</bundles_post_ra>
